<compile_context>
chip_gen: v7x
topology: tpu7x:2x2x1
jax: 0.10.0
libtpu: 0.0.40
codegen_flags: <defaults>
</compile_context>

<pallas_src>
import functools

import jax
import jax.numpy as jnp
from jax.experimental import pallas as pl
from jax.experimental.pallas import tpu as pltpu


def _sge_kernel(w_ref, b_ref, x_ref, o_ref, *, groups, true_hw):
    """One grid step = `bt` full batch rows, all channels, lane-padded spatial.

    w_ref / b_ref : (groups,) float32 in SMEM (scalar-prefetched once).
    x_ref / o_ref : (bt, C, HW_pad) blocks in VMEM.
    """
    bt, c, hw_pad = x_ref.shape
    cg = c // groups
    inv_hw = 1.0 / true_hw
    inv_hwm1 = (1.0 / (true_hw - 1)) if true_hw > 1 else float("inf")

    # Per-group static channel slices: no full-block xn / gate_c temporaries,
    # no group reshape relayouts.  Unrolled (groups is a small static int).
    for j in range(groups):
        sl = slice(j * cg, (j + 1) * cg)
        xs = x_ref[:, sl, :].astype(jnp.float32)                  # (bt, cg, hw)

        # AdaptiveAvgPool2d(1): per-channel spatial mean over the TRUE hw
        # (padded lanes are zero and contribute nothing to the sum).
        chan_mean = jnp.sum(xs, axis=2, keepdims=True) * inv_hw   # (bt, cg, 1)

        # t = sum_c (x_c * mean_c); the product only feeds the reduction.
        t = jnp.sum(xs * chan_mean, axis=1)                       # (bt, hw)

        # Spatial stats: one-pass sum / sum-of-squares (padded zeros inert),
        # unbiased variance (torch.Tensor.std default), clamped >= 0 against
        # f32 cancellation so rsqrt never sees a negative.
        s1 = jnp.sum(t, axis=1, keepdims=True)                    # (bt, 1)
        s2 = jnp.sum(t * t, axis=1, keepdims=True)                # (bt, 1)
        mean = s1 * inv_hw
        var = jnp.maximum((s2 - mean * s1) * inv_hwm1, 0.0)

        # Per-group affine folded into the rsqrt scale (EUP slot).
        scale = w_ref[j] * jax.lax.rsqrt(var)                     # (bt, 1)
        gate = jax.nn.sigmoid((t - mean) * scale + b_ref[j])      # (bt, hw)

        # Apply the gate with an in-multiply broadcast; store straight into
        # the output slice (lane-dense stores, no materialized gate_c).
        o_ref[:, sl, :] = (xs * gate[:, None, :]).astype(o_ref.dtype)


def spatial_group_enhance(x, weight, bias, groups, *, block_batch=None):
    """x: (b, c, h, w). weight, bias: (1, groups, 1, 1). Returns (b, c, h, w)."""
    b, c, h, w = x.shape
    assert c % groups == 0
    hw = h * w

    # Lane-dense layout: flatten spatial into the last dim and zero-pad to a
    # multiple of 128 so every store is an unmasked full-lane vst.  All kernel
    # divisors use the TRUE hw, so statistics remain exact.
    hw_pad = ((hw + 127) // 128) * 128
    x3 = x.reshape(b, c, hw)
    if hw_pad != hw:
        x3 = jnp.pad(x3, ((0, 0), (0, 0), (0, hw_pad - hw)))

    # Per-group scalars -> plain f32 scalar prefetch (SMEM, loaded once).
    w_vec = weight.reshape(groups).astype(jnp.float32)
    b_vec = bias.reshape(groups).astype(jnp.float32)

    # Generation-aware VMEM budget / block size: 64-MiB-VMEM parts (v7x) get a
    # 48 MiB scoped limit, 128-MiB parts (v5e/v6e) get 64 MiB.  Target block
    # ~ limit/6 so 2x(in)+2x(out) double buffers plus the per-group f32
    # temporaries fit with headroom.  No ">=2 grid steps" cap — on single-TC
    # chips it only shrank DMAs; with large inputs b//bt >= 2 falls out anyway.
    try:
        vmem_cap = int(pltpu.get_tpu_info().vmem_capacity_bytes)
    except Exception:
        vmem_cap = 128 * 1024 * 1024
    vmem_limit = (48 * 1024 * 1024 if vmem_cap <= 64 * 1024 * 1024
                  else 64 * 1024 * 1024)

    if block_batch is None:
        bytes_per_row = c * hw_pad * x.dtype.itemsize
        target = vmem_limit // 6
        bt = max(1, min(b, target // max(bytes_per_row, 1)))
        while b % bt:
            bt -= 1
    else:
        bt = block_batch
    assert b % bt == 0

    # TODO(synk): for v7x megacore with tiny b, add a second "parallel" grid
    # axis over groups (needs c/groups to be a multiple of the sublane tile).

    out3 = pl.pallas_call(
        functools.partial(_sge_kernel, groups=groups, true_hw=hw),
        out_shape=jax.ShapeDtypeStruct((b, c, hw_pad), x.dtype),
        grid_spec=pltpu.PrefetchScalarGridSpec(
            num_scalar_prefetch=2,
            grid=(b // bt,),
            in_specs=[
                pl.BlockSpec((bt, c, hw_pad), lambda i, wr, br: (i, 0, 0)),
            ],
            out_specs=pl.BlockSpec((bt, c, hw_pad), lambda i, wr, br: (i, 0, 0)),
        ),
        compiler_params=pltpu.CompilerParams(
            dimension_semantics=("parallel",),
            vmem_limit_bytes=vmem_limit,
        ),
    )(w_vec, b_vec, x3)

    if hw_pad != hw:
        out3 = out3[:, :, :hw]
    return out3.reshape(b, c, h, w)


def _reference(x, weight, bias, groups):
    """Pure-JAX replica of the PyTorch forward, for verification."""
    b, c, h, w = x.shape
    xg = x.reshape(b * groups, -1, h, w)
    xn = xg * jnp.mean(xg, axis=(2, 3), keepdims=True)
    xn = jnp.sum(xn, axis=1, keepdims=True)
    t = xn.reshape(b * groups, -1)
    t = t - jnp.mean(t, axis=1, keepdims=True)
    std = jnp.std(t, axis=1, keepdims=True, ddof=1)   # torch default: unbiased
    t = t / std
    t = t.reshape(b, groups, h, w)
    t = t * weight + bias
    t = t.reshape(b * groups, 1, h, w)
    out = xg * jax.nn.sigmoid(t)
    return out.reshape(b, c, h, w)


def _check(key, b, c, h, w, groups):
    kx, kw, kb = jax.random.split(key, 3)
    x = jax.random.normal(kx, (b, c, h, w), dtype=jnp.float32)
    # Module __init__ uses zeros; use small nonzero values so the affine path
    # is actually exercised.
    weight = 0.1 * jax.random.normal(kw, (1, groups, 1, 1), dtype=jnp.float32)
    bias = 0.1 * jax.random.normal(kb, (1, groups, 1, 1), dtype=jnp.float32)

    fn = jax.jit(functools.partial(spatial_group_enhance, groups=groups))
    out = jax.block_until_ready(fn(x, weight, bias))
    ref = _reference(x, weight, bias, groups)
    assert out.shape == (b, c, h, w)
    err = float(jnp.max(jnp.abs(out - ref)))
    assert jnp.allclose(out, ref, atol=1e-5, rtol=1e-5), err


if __name__ == "__main__":
    key = jax.random.PRNGKey(0)
    k1, k2 = jax.random.split(key)
    # Lane-aligned spatial dim (16*16 = 256), cg = 4.
    _check(k1, b=2, c=8, h=16, w=16, groups=2)
    # Non-aligned spatial dim (10*10 = 100 -> padded to 128), cg = 2, odd b.
    _check(k2, b=3, c=8, h=10, w=10, groups=4)
    print("KERNEL_OK")
</pallas_src>

<mosaic_0001>
module attributes {stable_mosaic.version = 11 : i64} {
  func.func @_sge_kernel(%arg0: i32, %arg1: memref<2xf32, #tpu.memory_space<smem>>, %arg2: memref<2xf32, #tpu.memory_space<smem>>, %arg3: memref<2x8x256xf32, #tpu.memory_space<vmem>>, %arg4: memref<2x8x256xf32, #tpu.memory_space<vmem>>) attributes {dimension_semantics = [#tpu.dimension_semantics<parallel>], iteration_bounds = array<i64: 1>, scalar_prefetch = 2 : i64, scratch_operands = 0 : i64, tpu.core_type = #tpu.core_type<tc>, window_params = [{transform_indices = @transform_0, window_bounds = array<i64: 2, 8, 256>}, {transform_indices = @transform_1, window_bounds = array<i64: 2, 8, 256>}]} {
    %c0 = arith.constant 0 : index
    %c0_0 = arith.constant 0 : index
    %c0_1 = arith.constant 0 : index
    %0 = vector.load %arg3[%c0, %c0_0, %c0_1] : memref<2x8x256xf32, #tpu.memory_space<vmem>>, vector<2x4x256xf32>
    %cst = arith.constant dense<0.000000e+00> : vector<2x4xf32>
    %1 = vector.multi_reduction <add>, %0, %cst [2] : vector<2x4x256xf32> to vector<2x4xf32>
    %2 = vector.shape_cast %1 : vector<2x4xf32> to vector<2x4x1xf32>
    %cst_2 = arith.constant 3.906250e-03 : f32
    %3 = vector.broadcast %cst_2 : f32 to vector<2x4x1xf32>
    %4 = arith.mulf %2, %3 : vector<2x4x1xf32>
    %5 = vector.broadcast %4 : vector<2x4x1xf32> to vector<2x4x256xf32>
    %6 = arith.mulf %0, %5 : vector<2x4x256xf32>
    %cst_3 = arith.constant dense<0.000000e+00> : vector<2x256xf32>
    %7 = vector.multi_reduction <add>, %6, %cst_3 [1] : vector<2x4x256xf32> to vector<2x256xf32>
    %cst_4 = arith.constant dense<0.000000e+00> : vector<2xf32>
    %8 = vector.multi_reduction <add>, %7, %cst_4 [1] : vector<2x256xf32> to vector<2xf32>
    %9 = vector.shape_cast %8 : vector<2xf32> to vector<2x1xf32>
    %10 = arith.mulf %7, %7 : vector<2x256xf32>
    %cst_5 = arith.constant dense<0.000000e+00> : vector<2xf32>
    %11 = vector.multi_reduction <add>, %10, %cst_5 [1] : vector<2x256xf32> to vector<2xf32>
    %12 = vector.shape_cast %11 : vector<2xf32> to vector<2x1xf32>
    %cst_6 = arith.constant 3.906250e-03 : f32
    %13 = vector.broadcast %cst_6 : f32 to vector<2x1xf32>
    %14 = arith.mulf %9, %13 : vector<2x1xf32>
    %15 = arith.mulf %14, %9 : vector<2x1xf32>
    %16 = arith.subf %12, %15 : vector<2x1xf32>
    %cst_7 = arith.constant 0.00392156886 : f32
    %17 = vector.broadcast %cst_7 : f32 to vector<2x1xf32>
    %18 = arith.mulf %16, %17 : vector<2x1xf32>
    %cst_8 = arith.constant 0.000000e+00 : f32
    %19 = vector.broadcast %cst_8 : f32 to vector<2x1xf32>
    %20 = arith.maximumf %18, %19 : vector<2x1xf32>
    %c0_9 = arith.constant 0 : index
    %21 = memref.load %arg1[%c0_9] : memref<2xf32, #tpu.memory_space<smem>>
    %22 = math.rsqrt %20 : vector<2x1xf32>
    %23 = vector.broadcast %21 : f32 to vector<2x1xf32>
    %24 = arith.mulf %23, %22 : vector<2x1xf32>
    %25 = vector.broadcast %14 : vector<2x1xf32> to vector<2x256xf32>
    %26 = arith.subf %7, %25 : vector<2x256xf32>
    %27 = vector.broadcast %24 : vector<2x1xf32> to vector<2x256xf32>
    %28 = arith.mulf %26, %27 : vector<2x256xf32>
    %c0_10 = arith.constant 0 : index
    %29 = memref.load %arg2[%c0_10] : memref<2xf32, #tpu.memory_space<smem>>
    %30 = vector.broadcast %29 : f32 to vector<2x256xf32>
    %31 = arith.addf %28, %30 : vector<2x256xf32>
    %32 = arith.negf %31 : vector<2x256xf32>
    %33 = math.exp %32 : vector<2x256xf32>
    %cst_11 = arith.constant 1.000000e+00 : f32
    %34 = vector.broadcast %cst_11 : f32 to vector<2x256xf32>
    %35 = arith.addf %34, %33 : vector<2x256xf32>
    %36 = arith.divf %34, %35 : vector<2x256xf32>
    %37 = vector.shape_cast %36 : vector<2x256xf32> to vector<2x1x256xf32>
    %38 = vector.broadcast %37 : vector<2x1x256xf32> to vector<2x4x256xf32>
    %39 = arith.mulf %0, %38 : vector<2x4x256xf32>
    %c0_12 = arith.constant 0 : index
    %c0_13 = arith.constant 0 : index
    %c0_14 = arith.constant 0 : index
    %40 = vector.load %arg4[%c0_12, %c0_13, %c0_14] : memref<2x8x256xf32, #tpu.memory_space<vmem>>, vector<2x4x256xf32>
    tpu.vector_store %arg4[%c0_12, %c0_13, %c0_14], %39 {strides = array<i32>} : memref<2x8x256xf32, #tpu.memory_space<vmem>>, vector<2x4x256xf32>,
    %c0_15 = arith.constant 0 : index
    %c4 = arith.constant 4 : index
    %c0_16 = arith.constant 0 : index
    %41 = vector.load %arg3[%c0_15, %c4, %c0_16] : memref<2x8x256xf32, #tpu.memory_space<vmem>>, vector<2x4x256xf32>
    %cst_17 = arith.constant dense<0.000000e+00> : vector<2x4xf32>
    %42 = vector.multi_reduction <add>, %41, %cst_17 [2] : vector<2x4x256xf32> to vector<2x4xf32>
    %43 = vector.shape_cast %42 : vector<2x4xf32> to vector<2x4x1xf32>
    %cst_18 = arith.constant 3.906250e-03 : f32
    %44 = vector.broadcast %cst_18 : f32 to vector<2x4x1xf32>
    %45 = arith.mulf %43, %44 : vector<2x4x1xf32>
    %46 = vector.broadcast %45 : vector<2x4x1xf32> to vector<2x4x256xf32>
    %47 = arith.mulf %41, %46 : vector<2x4x256xf32>
    %cst_19 = arith.constant dense<0.000000e+00> : vector<2x256xf32>
    %48 = vector.multi_reduction <add>, %47, %cst_19 [1] : vector<2x4x256xf32> to vector<2x256xf32>
    %cst_20 = arith.constant dense<0.000000e+00> : vector<2xf32>
    %49 = vector.multi_reduction <add>, %48, %cst_20 [1] : vector<2x256xf32> to vector<2xf32>
    %50 = vector.shape_cast %49 : vector<2xf32> to vector<2x1xf32>
    %51 = arith.mulf %48, %48 : vector<2x256xf32>
    %cst_21 = arith.constant dense<0.000000e+00> : vector<2xf32>
    %52 = vector.multi_reduction <add>, %51, %cst_21 [1] : vector<2x256xf32> to vector<2xf32>
    %53 = vector.shape_cast %52 : vector<2xf32> to vector<2x1xf32>
    %cst_22 = arith.constant 3.906250e-03 : f32
    %54 = vector.broadcast %cst_22 : f32 to vector<2x1xf32>
    %55 = arith.mulf %50, %54 : vector<2x1xf32>
    %56 = arith.mulf %55, %50 : vector<2x1xf32>
    %57 = arith.subf %53, %56 : vector<2x1xf32>
    %cst_23 = arith.constant 0.00392156886 : f32
    %58 = vector.broadcast %cst_23 : f32 to vector<2x1xf32>
    %59 = arith.mulf %57, %58 : vector<2x1xf32>
    %cst_24 = arith.constant 0.000000e+00 : f32
    %60 = vector.broadcast %cst_24 : f32 to vector<2x1xf32>
    %61 = arith.maximumf %59, %60 : vector<2x1xf32>
    %c1 = arith.constant 1 : index
    %62 = memref.load %arg1[%c1] : memref<2xf32, #tpu.memory_space<smem>>
    %63 = math.rsqrt %61 : vector<2x1xf32>
    %64 = vector.broadcast %62 : f32 to vector<2x1xf32>
    %65 = arith.mulf %64, %63 : vector<2x1xf32>
    %66 = vector.broadcast %55 : vector<2x1xf32> to vector<2x256xf32>
    %67 = arith.subf %48, %66 : vector<2x256xf32>
    %68 = vector.broadcast %65 : vector<2x1xf32> to vector<2x256xf32>
    %69 = arith.mulf %67, %68 : vector<2x256xf32>
    %c1_25 = arith.constant 1 : index
    %70 = memref.load %arg2[%c1_25] : memref<2xf32, #tpu.memory_space<smem>>
    %71 = vector.broadcast %70 : f32 to vector<2x256xf32>
    %72 = arith.addf %69, %71 : vector<2x256xf32>
    %73 = arith.negf %72 : vector<2x256xf32>
    %74 = math.exp %73 : vector<2x256xf32>
    %cst_26 = arith.constant 1.000000e+00 : f32
    %75 = vector.broadcast %cst_26 : f32 to vector<2x256xf32>
    %76 = arith.addf %75, %74 : vector<2x256xf32>
    %77 = arith.divf %75, %76 : vector<2x256xf32>
    %78 = vector.shape_cast %77 : vector<2x256xf32> to vector<2x1x256xf32>
    %79 = vector.broadcast %78 : vector<2x1x256xf32> to vector<2x4x256xf32>
    %80 = arith.mulf %41, %79 : vector<2x4x256xf32>
    %c0_27 = arith.constant 0 : index
    %c4_28 = arith.constant 4 : index
    %c0_29 = arith.constant 0 : index
    %81 = vector.load %arg4[%c0_27, %c4_28, %c0_29] : memref<2x8x256xf32, #tpu.memory_space<vmem>>, vector<2x4x256xf32>
    tpu.vector_store %arg4[%c0_27, %c4_28, %c0_29], %80 {strides = array<i32>} : memref<2x8x256xf32, #tpu.memory_space<vmem>>, vector<2x4x256xf32>,
    return
  }
  func.func @transform_0(%arg0: i32, %arg1: memref<2xf32, #tpu.memory_space<smem>>, %arg2: memref<2xf32, #tpu.memory_space<smem>>) -> (i32, i32, i32) {
    %c0_i32 = arith.constant 0 : i32
    %c0_i32_0 = arith.constant 0 : i32
    %c0_i32_1 = arith.constant 0 : i32
    return %arg0, %c0_i32, %c0_i32_0 : i32, i32, i32
  }
  func.func @transform_1(%arg0: i32, %arg1: memref<2xf32, #tpu.memory_space<smem>>, %arg2: memref<2xf32, #tpu.memory_space<smem>>) -> (i32, i32, i32) {
    %c0_i32 = arith.constant 0 : i32
    %c0_i32_0 = arith.constant 0 : i32
    %c0_i32_1 = arith.constant 0 : i32
    return %arg0, %c0_i32, %c0_i32_0 : i32, i32, i32
  }
}

</mosaic_0001>

<bundles_post_ra>
// kernel: spatial_group_enhance.1
= control target key start
LH: loop header
LB: loop body
LE: loop exit
PB: predicated region body
PF: predicated region fallthrough
CT: control target
= control target key end

     0   :  { %s696_s0 = inlined_call_operand.hbm [shape: f32[2], index: 0, kind: input, shape index: {}]   ;;  %s697_s2 = inlined_call_operand.hbm [shape: f32[2,8,256], index: 2, kind: input, shape index: {}]   ;;  %s698_s3 = inlined_call_operand.hbm [shape: f32[2,8,256], index: 3, kind: output, shape index: {}]   ;;  %s699_s1 = inlined_call_operand.hbm [shape: f32[2], index: 1, kind: input, shape index: {}]  }
   0x1   :  { %s430_s14 = scalar_lea.hbm %s696_s0, 16 }
   0x2   :  { %p431_p0 = scmp.ne.s32.totalorder %s696_s0, %s430_s14  ;;  %p434_p1 = scmp.lt.u32.totalorder %s430_s14, %s696_s0 }
   0x4   :  { %p436_p2 = pnand %p434_p1, %p431_p0 }
   0x6   :  { %439 = shalt.err (!%p436_p2)  }
   0x7   :  { %s500_s19 = smov [#allocation3]   ;;  %s440_s24 = scalar_lea.hbm %s699_s1, 16 }
   0x8   :  { %9 = dma.hbm_to_smem %s696_s0, 16, %s500_s19, [#allocation2] }
   0x9   :  { %p441_p3 = scmp.ne.s32.totalorder %s699_s1, %s440_s24  ;;  %p444_p4 = scmp.lt.u32.totalorder %s440_s24, %s699_s1 }
   0xb   :  { %p446_p5 = pnand %p444_p4, %p441_p3 }
   0xd   :  { %449 = shalt.err (!%p446_p5)  }
   0xe   :  { %s501_s29 = smov [#allocation4]  }
   0xf   :  { %11 = dma.hbm_to_smem %s699_s1, 16, %s501_s29, [#allocation2] }
  0x10   :  { %494 = dma.done.wait [#allocation2], 32 }
  0x11   :  { %495 = vsyncadd [#allocation2], 4294967264 }
  0x12   :  { %13 = sfence }
  0x13   :  { %14 = vsyncpa [#allocation6], 0 }
  0x14   :  { %15 = vsyncpa [#allocation7], 0  ;;  %s502_s0 = smov [#allocation5]   ;;  %s450_s8 = scalar_lea.hbm %s697_s2, 512 }
  0x15   :  { %s21_s5 = sshll.u32 %s502_s0, 4  ;;  %p451_p6 = scmp.ne.s32.totalorder %s697_s2, %s450_s8  ;;  %s22_s5 = int_to_ptr.vmem [resolvable:$true] %s21_s5 }
  0x16   :  { %p454_p7 = scmp.lt.u32.totalorder %s450_s8, %s697_s2 }
  0x18   :  { %p456_p8 = pnand %p454_p7, %p451_p6 }
  0x1a   :  { %459 = shalt.err (!%p456_p8)
}
  0x1b   :  { %s460_s1 = scalar_lea.vmem %s22_s5, 512  ;;  %p465_p10 = scmp.lt.s32.totalorder %s22_s5, %s22_s5 }
  0x1c   :  { %p461_p9 = scmp.ne.s32.totalorder %s22_s5, %s460_s1  ;;  %p466_p11 = scmp.lt.s32.totalorder %s460_s1, %s460_s1 }
  0x1e   :  { %p467_p12 = por %p466_p11, %p465_p10 }
  0x20   :  { %p468_p13 = pnand %p467_p12, %p461_p9 }
  0x22   :  { %471 = shalt.err (!%p468_p13)
}
  0x23   :  { %s503_s13 = smov 256   ;;  %s504_s14 = smov 16  }
  0x24   :  { %27 = dma.hbm_to_vmem [thread:$0]  %s697_s2, 512, %s22_s5, [#allocation6], %s503_s13, %s503_s13, %s504_s14  }
  0x25   :  { %496 = dma.done.wait [#allocation6], 512  }
  0x26   :  { %497 = vsyncadd [#allocation6], 4294966784  ;;  %vm195_vm0 = vcmask 1047556   ;;  %vm35_vm1 = vcmask 1043456   ;;  %v565_v0 = vld [vmem:[#allocation5] sm:$0xf0] }
  0x27   :  { %v567_v1 = vld [vmem:[#allocation5 + $0x8] sm:$0xf0]  ;;  %v569_v2 = vld [vmem:[#allocation5] sm:$0xf]  ;;  %v196_v3 = vsel %vm195_vm0, %v565_v0, 0.0  ;;  %vm84_vm2 = vcmask 1041409  }
  0x28   :  { %v197_v4 = vsel %vm195_vm0, %v567_v1, 0.0  ;;  %v573_v5 = vld [vmem:[#allocation5 + $0x8] sm:$0xf]  ;;  %v36_v6 = vsel %vm35_vm1, %v569_v2, 0.0  ;;  %v579_v9 = vld [vmem:[#allocation5 + $0x10] sm:$0xf0] }
  0x29   :  { %v198_v7 = vadd.f32 %v197_v4, %v196_v3  ;;  %v37_v8 = vsel %vm35_vm1, %v573_v5, 0.0  ;;  %v581_v10 = vld [vmem:[#allocation5 + $0x18] sm:$0xf0]  ;;  %v201_v12 = vsel %vm195_vm0, %v579_v9, 0.0  ;;  %v585_v14 = vld [vmem:[#allocation5 + $0x10] sm:$0xf] }
  0x2a   :  { %v38_v11 = vadd.f32 %v37_v8, %v36_v6  ;;  %v202_v13 = vsel %vm195_vm0, %v581_v10, 0.0  ;;  %v587_v15 = vld [vmem:[#allocation5 + $0x18] sm:$0xf]  ;;  %v41_v17 = vsel %vm35_vm1, %v585_v14, 0.0  ;;  %vm89_vm3 = vcmask 1041408   ;;  %s382_s2 = sld [smem:[#allocation3 + $0x1]] }
  0x2b   :  { %199 = vadd.xlane.f32.xlu0 %v198_v7  ;;  %v203_v16 = vadd.f32 %v202_v13, %v201_v12  ;;  %v42_v18 = vsel %vm35_vm1, %v587_v15, 0.0  ;;  %s117_s17 = sld [smem:[#allocation3]]  ;;  %s383_s19 = sld [smem:[#allocation4 + $0x1]] }
  0x2c   :  { %39 = vadd.xlane.f32.xlu1 %v38_v11  ;;  %v43_v19 = vadd.f32 %v42_v18, %v41_v17  ;;  %s137_s18 = sld [smem:[#allocation4]]  ;;  %s505_s20 = smov [#allocation8]  }
  0x2d   :  { %s366_s21 = sshll.u32 %s505_s20, 4  ;;  %s367_s21 = int_to_ptr.vmem [resolvable:$true] %s366_s21 }
  0x2e   :  { %s472_s22 = scalar_lea.vmem %s367_s21, 512  ;;  %p477_p1 = scmp.lt.s32.totalorder %s367_s21, %s367_s21 }
  0x2f   :  { %204 = vadd.xlane.f32.xlu0 %v203_v16  ;;  %p473_p0 = scmp.ne.s32.totalorder %s367_s21, %s472_s22  ;;  %p478_p2 = scmp.lt.s32.totalorder %s472_s22, %s472_s22 }
  0x30   :  { %44 = vadd.xlane.f32.xlu1 %v43_v19 }
  0x31   :  { %p479_p3 = por %p478_p2, %p477_p1 }
  0x33   :  { %p480_p4 = pnand %p479_p3, %p473_p0 }
  0xb8   :  { %v200_v20 = vpop.xlane.xlu0 %199 }
  0xb9   :  { %v206_v21 = vmul.f32 0.00390625, %v200_v20  ;;  %v40_v22 = vpop.xlane.xlu1 %39 }
  0xba   :  { %v46_v23 = vmul.f32 0.00390625, %v40_v22 }
  0xbb   :  { %v208_v24 = vmul.f32 %v206_v21, %v565_v0  ;;  %v209_v25 = vmul.f32 %v206_v21, %v567_v1 }
  0xbc   :  { %v48_v26 = vmul.f32 %v46_v23, %v569_v2  ;;  %v49_v27 = vmul.f32 %v46_v23, %v573_v5  ;;  %v205_v28 = vpop.xlane.xlu0 %204 }
  0xbd   :  { %v216_v29 = vrot.slane %v208_v24, 4  ;;  %v217_v30 = vrot.slane %v209_v25, 4  ;;  %v207_v31 = vmul.f32 0.00390625, %v205_v28  ;;  %v45_v32 = vpop.xlane.xlu1 %44 }
  0xbe   :  { %v52_v33 = vsel %vm35_vm1, %v48_v26, 0.0  ;;  %v59_v34 = vsel %vm35_vm1, %v49_v27, 0.0  ;;  %v47_v35 = vmul.f32 0.00390625, %v45_v32 }
  0xbf   :  { %v224_v36 = vsel %vm35_vm1, %v216_v29, 0.0  ;;  %v231_v37 = vsel %vm35_vm1, %v217_v30, 0.0  ;;  %v53_v38 = vrot.slane %v52_v33, 4  ;;  %v60_v39 = vrot.slane %v59_v34, 4 }
  0xc0   :  { %v225_v40 = vrot.slane %v224_v36, 4  ;;  %v232_v41 = vrot.slane %v231_v37, 4  ;;  %v210_v42 = vmul.f32 %v207_v31, %v579_v9  ;;  %v211_v43 = vmul.f32 %v207_v31, %v581_v10 }
  0xc1   :  { %v54_v44 = vadd.f32 %v53_v38, %v52_v33  ;;  %v61_v45 = vadd.f32 %v60_v39, %v59_v34  ;;  %v50_v46 = vmul.f32 %v47_v35, %v585_v14  ;;  %v51_v47 = vmul.f32 %v47_v35, %v587_v15 }
  0xc2   :  { %v226_v48 = vadd.f32 %v225_v40, %v224_v36  ;;  %v233_v49 = vadd.f32 %v232_v41, %v231_v37  ;;  %v218_v50 = vrot.slane %v210_v42, 4  ;;  %v219_v51 = vrot.slane %v211_v43, 4 }
  0xc3   :  { %v55_v52 = vrot.slane %v54_v44, 2  ;;  %v62_v53 = vrot.slane %v61_v45, 2  ;;  %v66_v54 = vsel %vm35_vm1, %v50_v46, 0.0  ;;  %v73_v55 = vsel %vm35_vm1, %v51_v47, 0.0 }
  0xc4   :  { %v227_v56 = vrot.slane %v226_v48, 2  ;;  %v234_v57 = vrot.slane %v233_v49, 2  ;;  %v238_v58 = vsel %vm35_vm1, %v218_v50, 0.0  ;;  %v245_v59 = vsel %vm35_vm1, %v219_v51, 0.0 }
  0xc5   :  { %v56_v60 = vadd.f32 %v55_v52, %v54_v44  ;;  %v63_v61 = vadd.f32 %v62_v53, %v61_v45  ;;  %v239_v62 = vrot.slane %v238_v58, 4  ;;  %v246_v63 = vrot.slane %v245_v59, 4 }
  0xc6   :  { %v228_v3 = vadd.f32 %v227_v56, %v226_v48  ;;  %v235_v4 = vadd.f32 %v234_v57, %v233_v49  ;;  %v67_v6 = vrot.slane %v66_v54, 4  ;;  %v74_v7 = vrot.slane %v73_v55, 4 }
  0xc7   :  { %v57_v8 = vrot.slane %v56_v60, 1  ;;  %v64_v11 = vrot.slane %v63_v61, 1  ;;  %v240_v12 = vadd.f32 %v239_v62, %v238_v58  ;;  %v247_v13 = vadd.f32 %v246_v63, %v245_v59 }
  0xc8   :  { %v68_v16 = vadd.f32 %v67_v6, %v66_v54  ;;  %v75_v17 = vadd.f32 %v74_v7, %v73_v55  ;;  %v229_v18 = vrot.slane %v228_v3, 1  ;;  %v236_v19 = vrot.slane %v235_v4, 1 }
  0xc9   :  { %v241_v20 = vrot.slane %v240_v12, 2  ;;  %v248_v21 = vrot.slane %v247_v13, 2  ;;  %v609_v26 = vadd.f32 %v57_v8, %v56_v60  ;;  %v611_v27 = vadd.f32 %v64_v11, %v63_v61 }
  0xca   :  { %v69_v22 = vrot.slane %v68_v16, 2  ;;  %v76_v23 = vrot.slane %v75_v17, 2  ;;  %v613_v30 = vadd.f32 %v229_v18, %v228_v3  ;;  %v615_v31 = vadd.f32 %v236_v19, %v235_v4 }
  0xcb   :  { %v242_v24 = vadd.f32 %v241_v20, %v240_v12  ;;  %v249_v25 = vadd.f32 %v248_v21, %v247_v13  ;;  %v95_v38 = vmul.f32 %v609_v26, %v609_v26  ;;  %v96_v39 = vmul.f32 %v611_v27, %v611_v27 }
  0xcc   :  { %v70_v28 = vadd.f32 %v69_v22, %v68_v16  ;;  %v77_v29 = vadd.f32 %v76_v23, %v75_v17  ;;  %v265_v42 = vmul.f32 %v613_v30, %v613_v30  ;;  %v266_v43 = vmul.f32 %v615_v31, %v615_v31 }
  0xcd   :  { %v243_v32 = vrot.slane %v242_v24, 1  ;;  %v250_v33 = vrot.slane %v249_v25, 1 }
  0xce   :  { %v71_v34 = vrot.slane %v70_v28, 1  ;;  %v78_v35 = vrot.slane %v77_v29, 1 }
  0xcf   :  { %v617_v36 = vadd.f32 %v243_v32, %v242_v24  ;;  %v619_v37 = vadd.f32 %v250_v33, %v249_v25  ;;  %v119_v33 = vstv %s117_s17 }
  0xd0   :  { %v625_v40 = vadd.f32 %v71_v34, %v70_v28  ;;  %v627_v41 = vadd.f32 %v78_v35, %v77_v29  ;;  %v289_v29 = vstv %s382_s2  ;;  %v138_v35 = vstv %s137_s18 }
  0xd1   :  { %v256_v44 = vsel %vm84_vm2, %v617_v36, %v613_v30  ;;  %v257_v45 = vsel %vm84_vm2, %v619_v37, %v615_v31  ;;  %v267_v46 = vmul.f32 %v617_v36, %v617_v36  ;;  %v268_v47 = vmul.f32 %v619_v37, %v619_v37 }
  0xd2   :  { %v85_v48 = vsel %vm84_vm2, %v625_v40, %v609_v26  ;;  %v86_v49 = vsel %vm84_vm2, %v627_v41, %v611_v27  ;;  %v260_v50 = vsel %vm89_vm3, %v256_v44, 0.0  ;;  %v261_v51 = vsel %vm89_vm3, %v257_v45, 0.0 }
  0xd3   :  { %v90_v52 = vsel %vm89_vm3, %v85_v48, 0.0  ;;  %v91_v53 = vsel %vm89_vm3, %v86_v49, 0.0  ;;  %v262_v54 = vadd.f32 %v261_v51, %v260_v50  ;;  %v97_v55 = vmul.f32 %v625_v40, %v625_v40 }
  0xd4   :  { %v92_v56 = vadd.f32 %v91_v53, %v90_v52  ;;  %v98_v57 = vmul.f32 %v627_v41, %v627_v41  ;;  %v273_v58 = vsel %vm84_vm2, %v267_v46, %v265_v42  ;;  %v274_v59 = vsel %vm84_vm2, %v268_v47, %v266_v43 }
  0xd5   :  { %263 = vadd.xlane.f32.xlu1 %v262_v54  ;;  %v103_v60 = vsel %vm84_vm2, %v97_v55, %v95_v38  ;;  %v277_v61 = vsel %vm89_vm3, %v273_v58, 0.0  ;;  %v278_v62 = vsel %vm89_vm3, %v274_v59, 0.0  ;;  %v308_v38 = vstv %s383_s19 }
  0xd6   :  { %93 = vadd.xlane.f32.xlu0 %v92_v56  ;;  %v104_v63 = vsel %vm84_vm2, %v98_v57, %v96_v39  ;;  %v107_v3 = vsel %vm89_vm3, %v103_v60, 0.0  ;;  %v279_v6 = vadd.f32 %v278_v62, %v277_v61 }
  0xd7   :  { %v108_v4 = vsel %vm89_vm3, %v104_v63, 0.0 }
  0xd8   :  { %v109_v7 = vadd.f32 %v108_v4, %v107_v3 }
  0xd9   :  { %280 = vadd.xlane.f32.xlu1 %v279_v6 }
  0xda   :  { %110 = vadd.xlane.f32.xlu0 %v109_v7 }
 0x162   :  { %v264_v8 = vpop.xlane.xlu1 %263 }
 0x163   :  { %v94_v11 = vpop.xlane.xlu0 %93  ;;  %v282_v12 = vmul.f32 0.00390625, %v264_v8 }
 0x164   :  { %v112_v13 = vmul.f32 0.00390625, %v94_v11 }
 0x165   :  { %v283_v16 = vmul.f32 %v282_v12, %v264_v8  ;;  %v292_v28 = vrot.slane %v282_v12, 1  ;;  %v295_v43 = vsub.f32 %v613_v30, %v282_v12  ;;  %v296_v44 = vsub.f32 %v615_v31, %v282_v12 }
 0x166   :  { %v113_v17 = vmul.f32 %v112_v13, %v94_v11  ;;  %v281_v18 = vpop.xlane.xlu1 %280  ;;  %v122_v32 = vrot.slane %v112_v13, 1  ;;  %v125_v42 = vsub.f32 %v609_v26, %v112_v13  ;;  %v126_v46 = vsub.f32 %v611_v27, %v112_v13 }
 0x167   :  { %v111_v19 = vpop.xlane.xlu0 %110  ;;  %v284_v20 = vsub.f32 %v281_v18, %v283_v16  ;;  %v297_v47 = vsub.f32 %v617_v36, %v292_v28  ;;  %v298_v48 = vsub.f32 %v619_v37, %v292_v28 }
 0x168   :  { %v114_v21 = vsub.f32 %v111_v19, %v113_v17  ;;  %v127_v50 = vsub.f32 %v625_v40, %v122_v32  ;;  %v128_v54 = vsub.f32 %v627_v41, %v122_v32 }
 0x169   :  { %v285_v22 = vmul.f32 0.003921569, %v284_v20 }
 0x16a   :  { %v115_v23 = vmul.f32 0.003921569, %v114_v21  ;;  %v167_v21 = vlaneseq }
 0x16b   :  { %v286_v24 = vmax.f32 %v285_v22, 0.0 }
 0x16c   :  { %v116_v25 = vmax.f32 %v115_v23, 0.0 }
 0x16d   :  { %394 = vrsqrt.f32 %v286_v24 }
 0x16e   :  { %396 = vrsqrt.f32 %v116_v25 }
 0x177   :  { %v395_v34 = vpop.eup %394 }
 0x178   :  { %v397_v39 = vpop.eup %396  ;;  %v290_v45 = vmul.f32 %v395_v34, %v289_v29  ;;  %v168_v34 = vshrl.u32 %v167_v21, 7 }
 0x179   :  { %v120_v49 = vmul.f32 %v397_v39, %v119_v33 }
 0x17a   :  { %v300_v51 = vrot.slane %v290_v45, 1  ;;  %v303_v52 = vmul.f32 %v295_v43, %v290_v45  ;;  %v304_v53 = vmul.f32 %v296_v44, %v290_v45 }
 0x17b   :  { %v130_v26 = vrot.slane %v120_v49, 1  ;;  %v133_v55 = vmul.f32 %v125_v42, %v120_v49  ;;  %v134_v30 = vmul.f32 %v126_v46, %v120_v49 }
 0x17c   :  { %v305_v56 = vmul.f32 %v300_v51, %v297_v47  ;;  %v306_v31 = vmul.f32 %v300_v51, %v298_v48  ;;  %v309_v57 = vadd.f32 %v308_v38, %v303_v52  ;;  %v310_v58 = vadd.f32 %v308_v38, %v304_v53 }
 0x17d   :  { %v135_v27 = vmul.f32 %v130_v26, %v127_v50  ;;  %v136_v59 = vmul.f32 %v130_v26, %v128_v54  ;;  %v139_v36 = vadd.f32 %v138_v35, %v133_v55  ;;  %v140_v60 = vadd.f32 %v138_v35, %v134_v30 }
 0x17e   :  { %v311_v37 = vadd.f32 %v308_v38, %v305_v56  ;;  %v312_v61 = vadd.f32 %v308_v38, %v306_v31  ;;  %v384_v62 = vmul.f32 -1.442695, %v309_v57  ;;  %v385_v7 = vmul.f32 -1.442695, %v310_v58 }
 0x17f   :  { %v141_v40 = vadd.f32 %v138_v35, %v135_v27  ;;  %v142_v63 = vadd.f32 %v138_v35, %v136_v59  ;;  %v378_v3 = vmul.f32 -1.442695, %v139_v36  ;;  %v379_v4 = vmul.f32 -1.442695, %v140_v60 }
 0x180   :  { %398 = vpow2.f32 %v384_v62  ;;  %v386_v8 = vmul.f32 -1.442695, %v311_v37  ;;  %v387_v11 = vmul.f32 -1.442695, %v312_v61  ;;  %v169_v38 = vsub.s32 0, %v168_v34 }
 0x181   :  { %400 = vpow2.f32 %v378_v3  ;;  %v380_v41 = vmul.f32 -1.442695, %v141_v40  ;;  %v381_v6 = vmul.f32 -1.442695, %v142_v63 }
 0x182   :  { %402 = vpow2.f32 %v379_v4 }
 0x183   :  { %404 = vpow2.f32 %v380_v41 }
 0x184   :  { %406 = vpow2.f32 %v381_v6 }
 0x185   :  { %408 = vpow2.f32 %v385_v7 }
 0x186   :  { %410 = vpow2.f32 %v386_v8 }
 0x187   :  { %412 = vpow2.f32 %v387_v11 }
 0x18a   :  { %v399_v12 = vpop.eup %398 }
 0x18b   :  { %v401_v13 = vpop.eup %400  ;;  %v325_v16 = vadd.f32 1.0, %v399_v12 }
 0x18c   :  { %v403_v17 = vpop.eup %402  ;;  %v155_v18 = vadd.f32 1.0, %v401_v13 }
 0x18d   :  { %v405_v19 = vpop.eup %404  ;;  %v156_v20 = vadd.f32 1.0, %v403_v17  ;;  %414 = vrcp.f32 %v325_v16 }
 0x18e   :  { %v407_v22 = vpop.eup %406  ;;  %v157_v23 = vadd.f32 1.0, %v405_v19  ;;  %416 = vrcp.f32 %v155_v18 }
 0x18f   :  { %v409_v24 = vpop.eup %408  ;;  %v158_v25 = vadd.f32 1.0, %v407_v22  ;;  %418 = vrcp.f32 %v156_v20 }
 0x190   :  { %v411_v28 = vpop.eup %410  ;;  %420 = vrcp.f32 %v157_v23  ;;  %v326_v29 = vadd.f32 1.0, %v409_v24 }
 0x191   :  { %v413_v32 = vpop.eup %412  ;;  %422 = vrcp.f32 %v158_v25  ;;  %v327_v33 = vadd.f32 1.0, %v411_v28 }
 0x192   :  { %v328_v35 = vadd.f32 1.0, %v413_v32  ;;  %424 = vrcp.f32 %v326_v29 }
 0x193   :  { %426 = vrcp.f32 %v327_v33 }
 0x194   :  { %428 = vrcp.f32 %v328_v35 }
 0x197   :  { %v415_v39 = vpop.eup %414 }
 0x198   :  { %v417_v42 = vpop.eup %416  ;;  %v340_v43 = vrot.slane %v415_v39, %v169_v38 }
 0x199   :  { %v419_v44 = vpop.eup %418  ;;  %v170_v45 = vrot.slane %v417_v42, %v169_v38 }
 0x19a   :  { %v421_v46 = vpop.eup %420  ;;  %v174_v47 = vrot.slane %v419_v44, %v169_v38  ;;  %v353_v48 = vmul.f32 %v340_v43, %v565_v0 }
 0x19b   :  { %v423_v49 = vpop.eup %422  ;;  %v178_v50 = vrot.slane %v421_v46, %v169_v38  ;;  %v183_v51 = vmul.f32 %v170_v45, %v569_v2 }
 0x19c   :  { %v425_v52 = vpop.eup %424  ;;  %v182_v53 = vrot.slane %v423_v49, %v169_v38  ;;  %v184_v54 = vmul.f32 %v174_v47, %v573_v5  ;;  %357 = vst [vmem:[#allocation8] sm:$0xf0] %v353_v48 }
 0x19d   :  { %v427_v26 = vpop.eup %426  ;;  %v185_v55 = vmul.f32 %v178_v50, %v585_v14  ;;  %187 = vst [vmem:[#allocation8] sm:$0xf] %v183_v51  ;;  %v344_v30 = vrot.slane %v425_v52, %v169_v38 }
 0x19e   :  { %v429_v56 = vpop.eup %428  ;;  %v186_v31 = vmul.f32 %v182_v53, %v587_v15  ;;  %188 = vst [vmem:[#allocation8 + $0x8] sm:$0xf] %v184_v54  ;;  %v348_v57 = vrot.slane %v427_v26, %v169_v38 }
 0x19f   :  { %189 = vst [vmem:[#allocation8 + $0x10] sm:$0xf] %v185_v55  ;;  %v352_v0 = vrot.slane %v429_v56, %v169_v38  ;;  %v354_v2 = vmul.f32 %v344_v30, %v567_v1 }
 0x1a0   :  { %190 = vst [vmem:[#allocation8 + $0x18] sm:$0xf] %v186_v31  ;;  %v355_v5 = vmul.f32 %v348_v57, %v579_v9 }
 0x1a1   :  { %v356_v58 = vmul.f32 %v352_v0, %v581_v10  ;;  %358 = vst [vmem:[#allocation8 + $0x8] sm:$0xf0] %v354_v2 }
 0x1a2   :  { %359 = vst [vmem:[#allocation8 + $0x10] sm:$0xf0] %v355_v5 }
 0x1a3   :  { %360 = vst [vmem:[#allocation8 + $0x18] sm:$0xf0] %v356_v58 }
 0x1a4   :  { %483 = shalt.err (!%p480_p4)
}
 0x1a5   :  { %s484_s25 = scalar_lea.hbm %s698_s3, 512 }
 0x1a6   :  { %p485_p5 = scmp.ne.s32.totalorder %s698_s3, %s484_s25  ;;  %p488_p6 = scmp.lt.u32.totalorder %s484_s25, %s698_s3 }
 0x1a8   :  { %p490_p7 = pnand %p488_p6, %p485_p5 }
 0x1aa   :  { %493 = shalt.err (!%p490_p7)
}
 0x1ab   :  { %372 = dma.vmem_to_hbm [thread:$0]  %s367_s21, 512, %s698_s3, [#allocation7], %s503_s13, %s503_s13, %s504_s14  }
 0x1ac   :  { %498 = dma.done.wait [#allocation7], 512  }
 0x1ad   :  { %499 = vsyncadd [#allocation7], 4294966784 }
 0x1ae   :  { %376 = vsyncpa [#allocation6], 1 }
 0x1af   :  { %377 = vsyncpa [#allocation7], 1 }

</bundles_post_ra>
